<compile_context>
chip_gen: v7x
topology: tpu7x:2x2x1
jax: 0.10.0
libtpu: 0.0.40
codegen_flags: <defaults>
</compile_context>

<pallas_src>
import functools

import jax
import jax.numpy as jnp
from jax.experimental import pallas as pl
from jax.experimental.pallas import tpu as pltpu

_LANES = 128
_SUBLANES = 8
_MAX_TILE_M = 2048  # 2048*128*4B = 1 MiB per input buffer -> VMEM-safe on v7x


def _rmse_kernel(x_ref, y_ref, out_ref, acc_ref, *, total_elems):
    # Zero the vreg-shaped accumulator on the first grid step.
    @pl.when(pl.program_id(0) == 0)
    def _():
        acc_ref[...] = jnp.zeros_like(acc_ref)

    x = x_ref[...]
    y = y_ref[...]
    # Upcast only if needed (bf16 etc.); f32 inputs pass through untouched.
    if x.dtype != jnp.float32:
        x = x.astype(jnp.float32)
    if y.dtype != jnp.float32:
        y = y.astype(jnp.float32)

    d = x - y
    sq = d * d
    tm = sq.shape[0]
    # Fold the tile's sublane groups onto the (8, 128) accumulator: splitting
    # (tm, 128) -> (tm//8, 8, 128) is a pure sublane-axis split, and the
    # leading-axis reduction is plain vreg-to-vreg VPU adds (no XLU work in
    # the hot path).
    acc_ref[...] += jnp.sum(
        sq.reshape(tm // _SUBLANES, _SUBLANES, _LANES), axis=0
    )

    # Finalize once: single cross-lane reduce, mean, sqrt.
    @pl.when(pl.program_id(0) == pl.num_programs(0) - 1)
    def _():
        total = jnp.sum(acc_ref[...])
        rmse = jnp.sqrt(total / jnp.float32(total_elems))
        out_ref[...] = rmse.reshape(1, 1)


def rmse_loss(x, y):
    """sqrt(mean((x - y)**2)) — matches torch.sqrt(nn.MSELoss()(x, y))."""
    assert x.shape == y.shape, "RMSELoss expects matching shapes"
    total_elems = x.size

    # --- Lane-dense repack: flatten, pad to a multiple of 8*128, view (M, 128).
    xf = x.reshape(-1)
    yf = y.reshape(-1)
    chunk = _SUBLANES * _LANES
    pad = (-total_elems) % chunk
    if pad:
        xf = jnp.pad(xf, (0, pad))
        yf = jnp.pad(yf, (0, pad))
    m = xf.size // _LANES  # multiple of 8 by construction
    x2 = xf.reshape(m, _LANES)
    y2 = yf.reshape(m, _LANES)

    # --- Tile selection: one grid step if it fits, else 1 MiB-per-buffer tiles.
    if m <= _MAX_TILE_M:
        tile_m = m
    else:
        row_pad = (-m) % _MAX_TILE_M  # zero rows: no effect on the sum
        if row_pad:
            x2 = jnp.pad(x2, ((0, row_pad), (0, 0)))
            y2 = jnp.pad(y2, ((0, row_pad), (0, 0)))
            m += row_pad
        tile_m = _MAX_TILE_M
    grid = (m // tile_m,)

    out = pl.pallas_call(
        functools.partial(_rmse_kernel, total_elems=total_elems),
        out_shape=jax.ShapeDtypeStruct((1, 1), jnp.float32),
        grid_spec=pltpu.PrefetchScalarGridSpec(
            num_scalar_prefetch=0,
            grid=grid,
            in_specs=[
                pl.BlockSpec((tile_m, _LANES), lambda i: (i, 0)),
                pl.BlockSpec((tile_m, _LANES), lambda i: (i, 0)),
            ],
            out_specs=pl.BlockSpec((1, 1), lambda i: (0, 0)),
            scratch_shapes=[pltpu.VMEM((_SUBLANES, _LANES), jnp.float32)],
        ),
        compiler_params=pltpu.CompilerParams(
            dimension_semantics=("arbitrary",),
        ),
    )(x2, y2)

    return out[0, 0]


if __name__ == "__main__":
    key = jax.random.PRNGKey(0)
    kx, ky = jax.random.split(key)

    # batch=2, seq=8, hidden=32 — consistent with the LSTM training context.
    x = jax.random.normal(kx, (2, 8, 32), dtype=jnp.float32)
    y = jax.random.normal(ky, (2, 8, 32), dtype=jnp.float32)

    loss = rmse_loss(x, y)
    loss = jax.block_until_ready(loss)

    # Reference (same semantics as torch.sqrt(nn.MSELoss()(x, y))).
    ref = jnp.sqrt(jnp.mean((x - y) ** 2))
    assert jnp.allclose(loss, ref, rtol=1e-5, atol=1e-6), (loss, ref)

    print("KERNEL_OK")
</pallas_src>

<mosaic_0001>
module attributes {stable_mosaic.version = 11 : i64} {
  func.func @_rmse_kernel(%arg0: i32, %arg1: memref<8x128xf32, #tpu.memory_space<vmem>>, %arg2: memref<8x128xf32, #tpu.memory_space<vmem>>, %arg3: memref<1x1xf32, #tpu.memory_space<vmem>>, %arg4: memref<8x128xf32, #tpu.memory_space<vmem>>) attributes {dimension_semantics = [#tpu.dimension_semantics<arbitrary>], iteration_bounds = array<i64: 1>, scalar_prefetch = 0 : i64, scratch_operands = 1 : i64, tpu.core_type = #tpu.core_type<tc>, window_params = [{transform_indices = @transform_0, window_bounds = array<i64: 8, 128>}, {transform_indices = @transform_1, window_bounds = array<i64: 8, 128>}, {pipeline_mode = #tpu.pipeline_mode<synchronous>, transform_indices = @transform_2, window_bounds = array<i64: 1, 1>}]} {
    %c0_i32 = arith.constant 0 : i32
    %0 = arith.cmpi eq, %arg0, %c0_i32 : i32
    %1 = arith.extui %0 : i1 to i32
    %c0_i32_0 = arith.constant 0 : i32
    %2 = arith.cmpi ne, %1, %c0_i32_0 : i32
    scf.if %2 {
      %cst_10 = arith.constant 0.000000e+00 : f32
      %15 = vector.broadcast %cst_10 : f32 to vector<8x128xf32>
      %c0_11 = arith.constant 0 : index
      %c0_12 = arith.constant 0 : index
      %16 = vector.load %arg4[%c0_11, %c0_12] : memref<8x128xf32, #tpu.memory_space<vmem>>, vector<8x128xf32>
      tpu.vector_store %arg4[%c0_11, %c0_12], %15 {strides = array<i32>} : memref<8x128xf32, #tpu.memory_space<vmem>>, vector<8x128xf32>,
    } else {
    }
    %c0 = arith.constant 0 : index
    %c0_1 = arith.constant 0 : index
    %3 = vector.load %arg1[%c0, %c0_1] : memref<8x128xf32, #tpu.memory_space<vmem>>, vector<8x128xf32>
    %c0_2 = arith.constant 0 : index
    %c0_3 = arith.constant 0 : index
    %4 = vector.load %arg2[%c0_2, %c0_3] : memref<8x128xf32, #tpu.memory_space<vmem>>, vector<8x128xf32>
    %5 = arith.subf %3, %4 : vector<8x128xf32>
    %6 = arith.mulf %5, %5 : vector<8x128xf32>
    %c0_4 = arith.constant 0 : index
    %c0_5 = arith.constant 0 : index
    %7 = vector.load %arg4[%c0_4, %c0_5] : memref<8x128xf32, #tpu.memory_space<vmem>>, vector<8x128xf32>
    %8 = vector.shape_cast %6 : vector<8x128xf32> to vector<1x8x128xf32>
    %cst = arith.constant dense<0.000000e+00> : vector<8x128xf32>
    %9 = vector.multi_reduction <add>, %8, %cst [0] : vector<1x8x128xf32> to vector<8x128xf32>
    %10 = arith.addf %7, %9 : vector<8x128xf32>
    %c0_6 = arith.constant 0 : index
    %c0_7 = arith.constant 0 : index
    %11 = vector.load %arg4[%c0_6, %c0_7] : memref<8x128xf32, #tpu.memory_space<vmem>>, vector<8x128xf32>
    tpu.vector_store %arg4[%c0_6, %c0_7], %10 {strides = array<i32>} : memref<8x128xf32, #tpu.memory_space<vmem>>, vector<8x128xf32>,
    %c0_i32_8 = arith.constant 0 : i32
    %12 = arith.cmpi eq, %arg0, %c0_i32_8 : i32
    %13 = arith.extui %12 : i1 to i32
    %c0_i32_9 = arith.constant 0 : i32
    %14 = arith.cmpi ne, %13, %c0_i32_9 : i32
    scf.if %14 {
      %c0_10 = arith.constant 0 : index
      %c0_11 = arith.constant 0 : index
      %15 = vector.load %arg4[%c0_10, %c0_11] : memref<8x128xf32, #tpu.memory_space<vmem>>, vector<8x128xf32>
      %16 = vector.shape_cast %15 : vector<8x128xf32> to vector<1x8x128xf32>
      %cst_12 = arith.constant dense<0.000000e+00> : vector<1xf32>
      %17 = vector.multi_reduction <add>, %16, %cst_12 [1, 2] : vector<1x8x128xf32> to vector<1xf32>
      %18 = vector.shape_cast %17 : vector<1xf32> to vector<1x1x1xf32>
      %19 = vector.extract %18[0, 0, 0] : f32 from vector<1x1x1xf32>
      %cst_13 = arith.constant 5.120000e+02 : f32
      %20 = arith.divf %19, %cst_13 : f32
      %21 = math.sqrt %20 : f32
      %22 = vector.broadcast %21 : f32 to vector<1x1xf32>
      %c0_14 = arith.constant 0 : index
      %c0_15 = arith.constant 0 : index
      %23 = vector.load %arg3[%c0_14, %c0_15] : memref<1x1xf32, #tpu.memory_space<vmem>>, vector<1x1xf32>
      tpu.vector_store %arg3[%c0_14, %c0_15], %22 {strides = array<i32>} : memref<1x1xf32, #tpu.memory_space<vmem>>, vector<1x1xf32>,
    } else {
    }
    return
  }
  func.func @transform_0(%arg0: i32) -> (i32, i32) {
    %c0_i32 = arith.constant 0 : i32
    %c0_i32_0 = arith.constant 0 : i32
    return %arg0, %c0_i32 : i32, i32
  }
  func.func @transform_1(%arg0: i32) -> (i32, i32) {
    %c0_i32 = arith.constant 0 : i32
    %c0_i32_0 = arith.constant 0 : i32
    return %arg0, %c0_i32 : i32, i32
  }
  func.func @transform_2(%arg0: i32) -> (i32, i32) {
    %c0_i32 = arith.constant 0 : i32
    %c0_i32_0 = arith.constant 0 : i32
    %c0_i32_1 = arith.constant 0 : i32
    return %c0_i32, %c0_i32_0 : i32, i32
  }
}

</mosaic_0001>

<bundles_post_ra>
// kernel: tpu_custom_call.1
= control target key start
LH: loop header
LB: loop body
LE: loop exit
PB: predicated region body
PF: predicated region fallthrough
CT: control target
= control target key end

     0   :  { %7 = vsyncpa [#allocation4], 0  ;;  %s228_s0 = inlined_call_operand.hbm [shape: f32[8,128], index: 0, kind: input, shape index: {}]   ;;  %s229_s1 = inlined_call_operand.hbm [shape: f32[8,128], index: 1, kind: input, shape index: {}]   ;;  %s230_s2 = inlined_call_operand.hbm [shape: f32[1,1], index: 2, kind: output, shape index: {}]  }
   0x1   :  { %8 = vsyncpa [#allocation7], 0 }
   0x2   :  { %9 = vsyncpa [#allocation5], 0  ;;  %s174_s9 = smov [#allocation3]   ;;  %s175_s11 = smov [#allocation6]  }
   0x3   :  { %s16_s10 = sshll.u32 %s174_s9, 4  ;;  %s26_s12 = sshll.u32 %s175_s11, 4  ;;  %s17_s10 = int_to_ptr.vmem [resolvable:$true] %s16_s10  ;;  %s27_s12 = int_to_ptr.vmem [resolvable:$true] %s26_s12 }
   0x4   :  { %s102_s15 = scalar_lea.hbm %s228_s0, 128 }
   0x5   :  { %p103_p0 = scmp.ne.s32.totalorder %s228_s0, %s102_s15  ;;  %p106_p1 = scmp.lt.u32.totalorder %s102_s15, %s228_s0 }
   0x7   :  { %p108_p2 = pnand %p106_p1, %p103_p0 }
   0x9   :  { %111 = shalt.err (!%p108_p2)
}
   0xa   :  { %s112_s20 = scalar_lea.vmem %s17_s10, 128  ;;  %p117_p4 = scmp.lt.s32.totalorder %s17_s10, %s17_s10 }
   0xb   :  { %p113_p3 = scmp.ne.s32.totalorder %s17_s10, %s112_s20  ;;  %p118_p5 = scmp.lt.s32.totalorder %s112_s20, %s112_s20 }
   0xd   :  { %p119_p6 = por %p118_p5, %p117_p4 }
   0xf   :  { %p120_p7 = pnand %p119_p6, %p113_p3 }
  0x11   :  { %123 = shalt.err (!%p120_p7)
}
  0x12   :  { %19 = dma.hbm_to_vmem [thread:$0]  %s228_s0, 128, %s17_s10, [#allocation4]  }
  0x13   :  { %s124_s25 = scalar_lea.hbm %s229_s1, 128 }
  0x14   :  { %p125_p8 = scmp.ne.s32.totalorder %s229_s1, %s124_s25  ;;  %p128_p9 = scmp.lt.u32.totalorder %s124_s25, %s229_s1 }
  0x16   :  { %p130_p10 = pnand %p128_p9, %p125_p8 }
  0x18   :  { %133 = shalt.err (!%p130_p10)
}
  0x19   :  { %s134_s30 = scalar_lea.vmem %s27_s12, 128  ;;  %p139_p12 = scmp.lt.s32.totalorder %s27_s12, %s27_s12 }
  0x1a   :  { %p135_p11 = scmp.ne.s32.totalorder %s27_s12, %s134_s30  ;;  %p140_p13 = scmp.lt.s32.totalorder %s134_s30, %s134_s30 }
  0x1c   :  { %p141_p0 = por %p140_p13, %p139_p12 }
  0x1e   :  { %p142_p1 = pnand %p141_p0, %p135_p11 }
  0x20   :  { %145 = shalt.err (!%p142_p1)
}
  0x21   :  { %29 = dma.hbm_to_vmem [thread:$0]  %s229_s1, 128, %s27_s12, [#allocation7]  }
  0x22   :  { %168 = dma.done.wait [#allocation4], 128  }
  0x23   :  { %169 = vsyncadd [#allocation4], 4294967168 }
  0x24   :  { %170 = dma.done.wait [#allocation7], 128  }
  0x25   :  { %171 = vsyncadd [#allocation7], 4294967168  ;;  %v41_v0 = vld [vmem:[#allocation3] sm:$0xff]  ;;  %v42_v1 = vld [vmem:[#allocation6] sm:$0xff]  ;;  %s176_s1 = smov [#allocation8]   ;;  %vm75_vm2 = vcmask 0  }
  0x26   :  { %v43_v2 = vsub.f32 %v41_v0, %v42_v1  ;;  %s83_s6 = sshll.u32 %s176_s1, 4  ;;  %s84_s6 = int_to_ptr.vmem [resolvable:$true] %s83_s6 }
  0x27   :  { %s146_s8 = scalar_lea.vmem %s84_s6, 16  ;;  %s150_s9 = scalar_lea.vmem %s84_s6, 32 }
  0x28   :  { %v44_v3 = vmul.f32 %v43_v2, %v43_v2  ;;  %p147_p2 = scmp.ne.s32.totalorder %s84_s6, %s146_s8  ;;  %p151_p3 = scmp.lt.s32.totalorder %s84_s6, %s84_s6 }
  0x29   :  { %p152_p4 = scmp.lt.s32.totalorder %s150_s9, %s146_s8 }
  0x2a   :  { %53 = vadd.xlane.f32.xlu0 %v44_v3 }
  0x2b   :  { %p153_p5 = por %p152_p4, %p151_p3 }
  0x2d   :  { %p154_p6 = pnand %p153_p5, %p147_p2 }
  0xb7   :  { %v54_v4 = vpop.xlane.xlu0 %53 }
  0xb8   :  { %v55_v5 = vrot.slane %v54_v4, 4 }
  0xba   :  { %v56_v6 = vadd.f32 %v55_v5, %v54_v4 }
  0xbc   :  { %v57_v7 = vrot.slane %v56_v6, 2 }
  0xbe   :  { %v58_v8 = vadd.f32 %v57_v7, %v56_v6 }
  0xc0   :  { %v59_v9 = vrot.slane %v58_v8, 1 }
  0xc2   :  { %v60_v10 = vadd.f32 %v59_v9, %v58_v8 }
  0xc4   :  { %93 = vpush %v60_v10 }
  0xf5   :  { %s94_s4 = spop %93 }
  0xf6   :  { %s64_s5 = smul.f32 0.001953125, %s94_s4 }
  0xf8   :  { %v65_v11 = vstv %s64_s5 }
  0xf9   :  { %100 = vrsqrt.f32 %v65_v11  ;;  %vm68_vm0 = vcmp.eq.f32.partialorder %v65_v11, inf  ;;  %v71_v14 = vand.u32 2147483648, %v65_v11  ;;  %vm70_vm1 = vcmp.eq.f32.partialorder %v65_v11, 0.0 }
 0x103   :  { %v101_v12 = vpop.eup %100 }
 0x104   :  { %v67_v13 = vmul.f32 %v101_v12, %v65_v11 }
 0x106   :  { %v69_v15 = vsel %vm68_vm0, %v65_v11, %v67_v13 }
 0x107   :  { %v72_v16 = vsel %vm70_vm1, %v71_v14, %v69_v15 }
 0x108   :  { %95 = vpush %v72_v16 }
 0x139   :  { %s96_s7 = spop %95 }
 0x13a   :  { %v74_v17 = vstv %s96_s7 }
 0x13b   :  { %76 = vst.msk [vmem:[#allocation8] sm:$0x1] %vm75_vm2, %v74_v17 }
 0x13c   :  { %157 = shalt.err (!%p154_p6)
}
 0x13d   :  { %s158_s12 = scalar_lea.hbm %s230_s2, 16 }
 0x13e   :  { %p159_p7 = scmp.ne.s32.totalorder %s230_s2, %s158_s12  ;;  %p162_p8 = scmp.lt.u32.totalorder %s158_s12, %s230_s2 }
 0x140   :  { %p164_p9 = pnand %p162_p8, %p159_p7 }
 0x142   :  { %167 = shalt.err (!%p164_p9)
}
 0x143   :  { %86 = dma.vmem_to_hbm [thread:$0]  %s84_s6, 16, %s230_s2, [#allocation5]  }
 0x144   :  { %172 = dma.done.wait [#allocation5], 16  }
 0x145   :  { %173 = vsyncadd [#allocation5], 4294967280 }
 0x146   :  { %90 = vsyncpa [#allocation4], 1 }
 0x147   :  { %91 = vsyncpa [#allocation7], 1 }
 0x148   :  { %92 = vsyncpa [#allocation5], 1 }

</bundles_post_ra>
